<compile_context>
chip_gen: v6e
topology: v6e:2x2x1
jax: 0.10.0
libtpu: 0.0.40
codegen_flags: <defaults>
</compile_context>

<pallas_src>
import jax
import jax.numpy as jnp
from jax.experimental import pallas as pl
from jax.experimental.pallas import tpu as pltpu


_FUSED_D_MAX = 2048  # D at or below this stays a single fused (un-tiled) block


def _round_up(x, m):
    return ((x + m - 1) // m) * m


def _kernel(inv_temp_ref, sim_ref, emb_ref, w_ref, recon_ref):
    """Fused scale -> diag-mask -> softmax -> (W @ E_tile) for one column tile.

    sim_ref / w_ref are the full resident (B, B) blocks; emb_ref / recon_ref are
    the current lane-dense (B, tn) column tiles.  The softmax is recomputed per
    tile (deterministic, tiny) so no cross-tile state is needed.
    """
    b = sim_ref.shape[0]
    s = sim_ref[...].astype(jnp.float32) * inv_temp_ref[0]
    row = jax.lax.broadcasted_iota(jnp.int32, (b, b), 0)
    col = jax.lax.broadcasted_iota(jnp.int32, (b, b), 1)
    # Single select producing the already-masked value (no 0/1e12 broadcast+sub).
    s = jnp.where(row == col, s - jnp.float32(1.0e12), s)
    m = jnp.max(s, axis=-1, keepdims=True)
    e = jnp.exp(s - m)
    w = e / jnp.sum(e, axis=-1, keepdims=True)  # exact divide: (B,B) is tiny
    w_ref[...] = w.astype(w_ref.dtype)
    # MXU matmul with f32 accumulation; W cast to the embedding dtype so bf16
    # embeddings are consumed natively.
    recon_ref[...] = jnp.dot(
        w.astype(emb_ref.dtype), emb_ref[...],
        preferred_element_type=jnp.float32).astype(recon_ref.dtype)


def _vmem_budget_bytes():
    """(streaming-tile budget, vmem_limit cap) sized per TPU generation."""
    try:
        cap = pltpu.get_tpu_info().vmem_capacity_bytes
    except Exception:  # interpret mode / query unavailable: assume v7x (smallest)
        cap = 64 << 20
    if cap >= (96 << 20):        # v5e / v6e: 128 MiB physical VMEM
        return 64 << 20, 96 << 20
    return 24 << 20, 40 << 20    # v7x: 64 MiB physical, 32 MiB scoped default


def _choose_d_tile(b, d, emb_bytes, out_bytes, tile_budget):
    """Biggest lane-dense column tile whose double-buffered E + recon tiles fit
    the per-generation budget, while keeping at least two tiles for overlap."""
    per_col = 2 * b * (emb_bytes + out_bytes)   # dbl-buffered E col + recon col
    tn = tile_budget // max(per_col, 1)
    # At least two column tiles so the streaming pipeline overlaps DMA/compute.
    half = _round_up(pl.cdiv(d, 2), 128)
    tn = min(tn, half)
    return max(128, (tn // 128) * 128)


def aggregate_reconstruct(sim_matrix, batch_oral_mask_emb, *, temperature,
                          d_tile=None):
    """JAX wrapper mirroring AggregateReconstruct.forward -> (W, R)."""
    b = batch_oral_mask_emb.shape[0]
    emb = batch_oral_mask_emb.reshape(b, -1)  # glue: same as torch .reshape
    d = emb.shape[1]
    emb_bytes = emb.dtype.itemsize
    out_dtype = emb.dtype  # match embedding dtype: halves writeback for bf16 E

    # Temperature lives in SMEM (scalar prefetch) so different values reuse one
    # compiled kernel.
    inv_t = jnp.full((1,), 1.0 / float(temperature), dtype=jnp.float32)

    tile_budget, vmem_cap = _vmem_budget_bytes()
    if d_tile is not None:
        tn = min(int(d_tile), d)
    elif d <= _FUSED_D_MAX:
        tn = d  # single fused block: launch overhead dominates at these sizes
    else:
        tn = _choose_d_tile(b, d, emb_bytes, emb_bytes, tile_budget)
    num_tiles = pl.cdiv(d, tn)

    # VMEM limit: double-buffered streaming tiles + resident (B,B) sim/W blocks,
    # clamped to the per-generation cap.
    sim_pad_bytes = _round_up(b, 8) * _round_up(b, 128) * 4
    need = 2 * b * tn * 2 * emb_bytes + 4 * sim_pad_bytes + (1 << 20)
    vmem_limit = int(min(max(2 * need, 32 << 20), vmem_cap))

    grid_spec = pltpu.PrefetchScalarGridSpec(
        num_scalar_prefetch=1,
        grid=(num_tiles,),
        in_specs=[
            pl.BlockSpec((b, b), lambda j, inv_t: (0, 0)),    # sim: resident
            pl.BlockSpec((b, tn), lambda j, inv_t: (0, j)),   # E: streamed tiles
        ],
        out_specs=(
            pl.BlockSpec((b, b), lambda j, inv_t: (0, 0)),    # W: resident
            pl.BlockSpec((b, tn), lambda j, inv_t: (0, j)),   # R: streamed tiles
        ),
    )

    w, recon = pl.pallas_call(
        _kernel,
        out_shape=(
            jax.ShapeDtypeStruct((b, b), jnp.float32),
            jax.ShapeDtypeStruct((b, d), out_dtype),
        ),
        grid_spec=grid_spec,
        compiler_params=pltpu.CompilerParams(
            dimension_semantics=("arbitrary",),
            vmem_limit_bytes=vmem_limit,
        ),
    )(inv_t, sim_matrix, emb)
    return w, recon


def _reference(sim_matrix, batch_oral_mask_emb, temperature):
    """Pure-JAX reference for correctness checks."""
    b = batch_oral_mask_emb.shape[0]
    s = sim_matrix / temperature
    s = s - jnp.eye(b, dtype=jnp.float32) * 1.0e12
    w = jax.nn.softmax(s, axis=-1)
    e = batch_oral_mask_emb.reshape(b, -1)
    return w, w @ e


if __name__ == "__main__":
    temperature = 0.5
    key = jax.random.PRNGKey(0)
    k1, k2, k3, k4 = jax.random.split(key, 4)

    # Case 1: small D -> single fused block (B=8, C=4, L=32 -> D=128).
    B, C, L = 8, 4, 32
    sim = jax.random.normal(k1, (B, B), dtype=jnp.float32)
    emb = jax.random.normal(k2, (B, C, L), dtype=jnp.float32)
    w, r = aggregate_reconstruct(sim, emb, temperature=temperature)
    jax.block_until_ready((w, r))
    w_ref, r_ref = _reference(sim, emb, temperature)
    assert w.shape == (B, B) and r.shape == (B, C * L)
    assert jnp.allclose(w, w_ref, atol=1e-3, rtol=1e-3)
    assert jnp.allclose(r, r_ref, atol=1e-3, rtol=1e-3)

    # Case 2: larger D with a forced small tile -> exercises the D-tiled,
    # double-buffered streaming path (B=8, C=4, L=128 -> D=512, grid=(4,)).
    B2, C2, L2 = 8, 4, 128
    sim2 = jax.random.normal(k3, (B2, B2), dtype=jnp.float32)
    emb2 = jax.random.normal(k4, (B2, C2, L2), dtype=jnp.float32)
    w2, r2 = aggregate_reconstruct(sim2, emb2, temperature=temperature,
                                   d_tile=128)
    jax.block_until_ready((w2, r2))
    w2_ref, r2_ref = _reference(sim2, emb2, temperature)
    assert w2.shape == (B2, B2) and r2.shape == (B2, C2 * L2)
    assert jnp.allclose(w2, w2_ref, atol=1e-3, rtol=1e-3)
    assert jnp.allclose(r2, r2_ref, atol=1e-3, rtol=1e-3)

    print("KERNEL_OK")
</pallas_src>

<mosaic_0001>
module attributes {stable_mosaic.version = 11 : i64} {
  func.func @_kernel(%arg0: i32, %arg1: memref<1xf32, #tpu.memory_space<smem>>, %arg2: memref<8x8xf32, #tpu.memory_space<vmem>>, %arg3: memref<8x128xf32, #tpu.memory_space<vmem>>, %arg4: memref<8x8xf32, #tpu.memory_space<vmem>>, %arg5: memref<8x128xf32, #tpu.memory_space<vmem>>) attributes {dimension_semantics = [#tpu.dimension_semantics<arbitrary>], iteration_bounds = array<i64: 1>, scalar_prefetch = 1 : i64, scratch_operands = 0 : i64, tpu.core_type = #tpu.core_type<tc>, window_params = [{pipeline_mode = #tpu.pipeline_mode<synchronous>, transform_indices = @transform_0, window_bounds = array<i64: 8, 8>}, {transform_indices = @transform_1, window_bounds = array<i64: 8, 128>}, {pipeline_mode = #tpu.pipeline_mode<synchronous>, transform_indices = @transform_2, window_bounds = array<i64: 8, 8>}, {transform_indices = @transform_3, window_bounds = array<i64: 8, 128>}]} {
    %c0 = arith.constant 0 : index
    %c0_0 = arith.constant 0 : index
    %0 = vector.load %arg2[%c0, %c0_0] : memref<8x8xf32, #tpu.memory_space<vmem>>, vector<8x8xf32>
    %c0_1 = arith.constant 0 : index
    %1 = memref.load %arg1[%c0_1] : memref<1xf32, #tpu.memory_space<smem>>
    %2 = vector.broadcast %1 : f32 to vector<8x8xf32>
    %3 = arith.mulf %0, %2 : vector<8x8xf32>
    %4 = tpu.iota {dimensions = array<i32: 0>} : vector<8x8xi32>
    %5 = tpu.iota {dimensions = array<i32: 1>} : vector<8x8xi32>
    %6 = arith.cmpi eq, %4, %5 : vector<8x8xi32>
    %cst = arith.constant 9.99999995E+11 : f32
    %7 = vector.broadcast %cst : f32 to vector<8x8xf32>
    %8 = arith.subf %3, %7 : vector<8x8xf32>
    %9 = arith.select %6, %8, %3 : vector<8x8xi1>, vector<8x8xf32>
    %cst_2 = arith.constant dense<0xFF800000> : vector<8xf32>
    %10 = vector.multi_reduction <maximumf>, %9, %cst_2 [1] : vector<8x8xf32> to vector<8xf32>
    %11 = vector.shape_cast %10 : vector<8xf32> to vector<8x1xf32>
    %12 = vector.broadcast %11 : vector<8x1xf32> to vector<8x8xf32>
    %13 = arith.subf %9, %12 : vector<8x8xf32>
    %14 = math.exp %13 : vector<8x8xf32>
    %cst_3 = arith.constant dense<0.000000e+00> : vector<8xf32>
    %15 = vector.multi_reduction <add>, %14, %cst_3 [1] : vector<8x8xf32> to vector<8xf32>
    %16 = vector.shape_cast %15 : vector<8xf32> to vector<8x1xf32>
    %17 = vector.broadcast %16 : vector<8x1xf32> to vector<8x8xf32>
    %18 = arith.divf %14, %17 : vector<8x8xf32>
    %c0_4 = arith.constant 0 : index
    %c0_5 = arith.constant 0 : index
    %19 = vector.load %arg4[%c0_4, %c0_5] : memref<8x8xf32, #tpu.memory_space<vmem>>, vector<8x8xf32>
    tpu.vector_store %arg4[%c0_4, %c0_5], %18 {strides = array<i32>} : memref<8x8xf32, #tpu.memory_space<vmem>>, vector<8x8xf32>,
    %c0_6 = arith.constant 0 : index
    %c0_7 = arith.constant 0 : index
    %20 = vector.load %arg3[%c0_6, %c0_7] : memref<8x128xf32, #tpu.memory_space<vmem>>, vector<8x128xf32>
    %cst_8 = arith.constant dense<0.000000e+00> : vector<8x128xf32>
    %21 = tpu.matmul %18, %20, %cst_8 {dimension_numbers = #tpu.dot_dimension_numbers<[1], [0], [0], [1], [0, 0, 1, 1], [], []>} : vector<8x8xf32>, vector<8x128xf32>, vector<8x128xf32> -> vector<8x128xf32>
    %c0_9 = arith.constant 0 : index
    %c0_10 = arith.constant 0 : index
    %22 = vector.load %arg5[%c0_9, %c0_10] : memref<8x128xf32, #tpu.memory_space<vmem>>, vector<8x128xf32>
    tpu.vector_store %arg5[%c0_9, %c0_10], %21 {strides = array<i32>} : memref<8x128xf32, #tpu.memory_space<vmem>>, vector<8x128xf32>,
    return
  }
  func.func @transform_0(%arg0: i32, %arg1: memref<1xf32, #tpu.memory_space<smem>>) -> (i32, i32) {
    %c0_i32 = arith.constant 0 : i32
    %c0_i32_0 = arith.constant 0 : i32
    %c0_i32_1 = arith.constant 0 : i32
    return %c0_i32, %c0_i32_0 : i32, i32
  }
  func.func @transform_1(%arg0: i32, %arg1: memref<1xf32, #tpu.memory_space<smem>>) -> (i32, i32) {
    %c0_i32 = arith.constant 0 : i32
    %c0_i32_0 = arith.constant 0 : i32
    return %c0_i32, %arg0 : i32, i32
  }
  func.func @transform_2(%arg0: i32, %arg1: memref<1xf32, #tpu.memory_space<smem>>) -> (i32, i32) {
    %c0_i32 = arith.constant 0 : i32
    %c0_i32_0 = arith.constant 0 : i32
    %c0_i32_1 = arith.constant 0 : i32
    return %c0_i32, %c0_i32_0 : i32, i32
  }
  func.func @transform_3(%arg0: i32, %arg1: memref<1xf32, #tpu.memory_space<smem>>) -> (i32, i32) {
    %c0_i32 = arith.constant 0 : i32
    %c0_i32_0 = arith.constant 0 : i32
    return %c0_i32, %arg0 : i32, i32
  }
}

</mosaic_0001>

<bundles_post_ra>
// kernel: tpu_custom_call.1
= control target key start
LH: loop header
LB: loop body
LE: loop exit
PB: predicated region body
PF: predicated region fallthrough
CT: control target
= control target key end

     0   :  { %11 = vsyncpa [#allocation5], 0  ;;  %s327_s0 = inlined_call_operand.<no memory space> [shape: f32[1], index: 0, kind: input, shape index: {}]   ;;  %s328_s1 = inlined_call_operand.hbm [shape: f32[8,8], index: 1, kind: input, shape index: {}]   ;;  %s329_s2 = inlined_call_operand.hbm [shape: f32[8,128], index: 2, kind: input, shape index: {}]   ;;  %s330_s3 = inlined_call_operand.hbm [shape: f32[8,8], index: 3, kind: output, shape index: {0}]   ;;  %s331_s4 = inlined_call_operand.hbm [shape: f32[8,128], index: 4, kind: output, shape index: {1}]  }
   0x1   :  { %12 = vsyncpa [#allocation8], 0 }
   0x2   :  { %13 = vsyncpa [#allocation6], 0 }
   0x3   :  { %14 = vsyncpa [#allocation11], 0  ;;  %s277_s15 = smov [#allocation4]   ;;  %s278_s17 = smov [#allocation7]  }
   0x4   :  { %s21_s16 = sshll.u32 %s277_s15, 4  ;;  %s31_s18 = sshll.u32 %s278_s17, 4  ;;  %s22_s16 = int_to_ptr.vmem [resolvable:$true] %s21_s16  ;;  %s32_s18 = int_to_ptr.vmem [resolvable:$true] %s31_s18 }
   0x5   :  { %s197_s19 = scalar_lea.vmem %s22_s16, 128  ;;  %p202_p1 = scmp.lt.s32.totalorder %s22_s16, %s22_s16 }
   0x6   :  { %p198_p0 = scmp.ne.s32.totalorder %s22_s16, %s197_s19  ;;  %p203_p2 = scmp.lt.s32.totalorder %s197_s19, %s197_s19 }
   0x8   :  { %p204_p3 = por %p203_p2, %p202_p1 }
   0xa   :  { %p205_p4 = pnand %p204_p3, %p198_p0 }
   0xc   :  { %208 = shalt.err (!%p205_p4)
}
   0xd   :  { %24 = dma.hbm_to_vmem [thread:$0]  %s328_s1, 128, %s22_s16, [#allocation5]  }
   0xe   :  { %s217_s22 = scalar_lea.vmem %s32_s18, 128  ;;  %p222_p6 = scmp.lt.s32.totalorder %s32_s18, %s32_s18 }
   0xf   :  { %p218_p5 = scmp.ne.s32.totalorder %s32_s18, %s217_s22  ;;  %p223_p7 = scmp.lt.s32.totalorder %s217_s22, %s217_s22 }
  0x11   :  { %p224_p8 = por %p223_p7, %p222_p6 }
  0x13   :  { %p225_p9 = pnand %p224_p8, %p218_p5 }
  0x15   :  { %228 = shalt.err (!%p225_p9)
}
  0x16   :  { %34 = dma.hbm_to_vmem [thread:$0]  %s329_s2, 128, %s32_s18, [#allocation8]  }
  0x17   :  { %269 = dma.done.wait [#allocation5], 128  }
  0x18   :  { %270 = vsyncadd [#allocation5], 4294967168 }
  0x19   :  { %271 = dma.done.wait [#allocation8], 128  }
  0x1a   :  { %272 = vsyncadd [#allocation8], 4294967168  ;;  %v45_v0 = vlaneseq  ;;  %v43_v1 = vstv %s327_s0  ;;  %v41_v4 = vld [vmem:[#allocation4] sm:$0xff]  ;;  %vm52_vm1 = vcmask 64512   ;;  %v65_v14 = vld [vmem:[#allocation7] sm:$0xff]  ;;  %v279_v15 = vmov 0.0  }
  0x1b   :  { %v44_v5 = vmul.f32 %v43_v1, %v41_v4  ;;  %174 = vmatprep.subr.mxu0 %v279_v15  ;;  %vm280_vm2 = vmmov 0   ;;  %s281_s0 = smov [#allocation9]  }
  0x1c   :  { %v46_v2 = vshrl.u32 %v45_v0, 7  ;;  %v48_v3 = vand.u32 127, %v45_v0  ;;  %176 = vmatprep.mubr.msk.f32.mxu0 %vm280_vm2, %v279_v15  ;;  %175 = vmatpush3.msra.mxu0 %v65_v14  ;;  %s146_s1 = sshll.u32 %s281_s0, 4  ;;  %s147_s1 = int_to_ptr.vmem [resolvable:$true] %s146_s1 }
  0x1d   :  { %v170_v6 = vadd.f32 -1e+12, %v44_v5  ;;  %s229_s2 = scalar_lea.vmem %s147_s1, 128  ;;  %p234_p11 = scmp.lt.s32.totalorder %s147_s1, %s147_s1 }
  0x1e   :  { %vm49_vm0 = vcmp.eq.s32.totalorder %v46_v2, %v48_v3  ;;  %p230_p10 = scmp.ne.s32.totalorder %s147_s1, %s229_s2  ;;  %p235_p12 = scmp.lt.s32.totalorder %s229_s2, %s229_s2 }
  0x1f   :  { %v51_v7 = vsel %vm49_vm0, %v170_v6, %v44_v5 }
  0x20   :  { %v53_v8 = vsel %vm52_vm1, %v51_v7, -inf  ;;  %p236_p13 = por %p235_p12, %p234_p11 }
  0x21   :  { %54 = vmax.xlane.f32.xlu0 %v53_v8 }
  0x22   :  { %p237_p0 = pnand %p236_p13, %p230_p10 }
  0xaa   :  { %v55_v9 = vpop.xlane.xlu0 %54 }
  0xab   :  { %v56_v10 = vsub.f32 %v51_v7, %v55_v9 }
  0xad   :  { %v57_v11 = vmul.f32 1.442695, %v56_v10 }
  0xaf   :  { %185 = vpow2.f32 %v57_v11 }
  0xbc   :  { %v186_v12 = vpop.eup %185 }
  0xbd   :  { %v59_v13 = vsel %vm52_vm1, %v186_v12, 0.0 }
  0xbe   :  { %60 = vadd.xlane.f32.xlu0 %v59_v13 }
 0x147   :  { %v61_v16 = vpop.xlane.xlu0 %60 }
 0x148   :  { %187 = vrcp.f32 %v61_v16 }
 0x155   :  { %v188_v17 = vpop.eup %187 }
 0x156   :  { %v63_v18 = vmul.f32 %v188_v17, %v186_v12 }
 0x158   :  { %177 = vmatmul.mubr.msk.f32.vlgmr.msra.gmra.mxu0 %vm52_vm1, %v63_v18  ;;  %64 = vst.msk [vmem:[#allocation9] sm:$0xff] %vm52_vm1, %v63_v18 }
 0x159   :  { %240 = shalt.err (!%p237_p0)
}
 0x15a   :  { %149 = dma.vmem_to_hbm [thread:$0]  %s147_s1, 128, %s330_s3, [#allocation6]  }
 0x15b   :  { %s282_s29 = smov [#allocation10]  }
 0x15c   :  { %s156_s30 = sshll.u32 %s282_s29, 4  ;;  %s157_s30 = int_to_ptr.vmem [resolvable:$true] %s156_s30 }
 0x15d   :  { %s249_s5 = scalar_lea.vmem %s157_s30, 128  ;;  %p254_p2 = scmp.lt.s32.totalorder %s157_s30, %s157_s30 }
 0x15e   :  { %p250_p1 = scmp.ne.s32.totalorder %s157_s30, %s249_s5  ;;  %p255_p3 = scmp.lt.s32.totalorder %s249_s5, %s249_s5 }
 0x160   :  { %p256_p4 = por %p255_p3, %p254_p2 }
 0x162   :  { %p257_p5 = pnand %p256_p4, %p250_p1 }
 0x218   :  { %v135_v19 = vpop.f32.mrf.mxu0 }
 0x219   :  { %139 = vst [vmem:[#allocation10] sm:$0xff] %v135_v19 }
 0x21a   :  { %v178_v20 = vpop.f32.mrf.mxu0 }
 0x21b   :  { %260 = shalt.err (!%p257_p5)
}
 0x21c   :  { %159 = dma.vmem_to_hbm [thread:$0]  %s157_s30, 128, %s331_s4, [#allocation11]  }
 0x21d   :  { %273 = dma.done.wait [#allocation6], 128  }
 0x21e   :  { %274 = vsyncadd [#allocation6], 4294967168 }
 0x21f   :  { %275 = dma.done.wait [#allocation11], 128  }
 0x220   :  { %276 = vsyncadd [#allocation11], 4294967168 }
 0x221   :  { %166 = vsyncpa [#allocation5], 1 }
 0x222   :  { %167 = vsyncpa [#allocation8], 1 }
 0x223   :  { %168 = vsyncpa [#allocation6], 1 }
 0x224   :  { %169 = vsyncpa [#allocation11], 1 }

</bundles_post_ra>
